<compile_context>
chip_gen: v7x
topology: tpu7x:2x2x1
jax: 0.10.0
libtpu: 0.0.40
codegen_flags: <defaults>
</compile_context>

<pallas_src>
import jax
import jax.numpy as jnp
import numpy as np
from jax.experimental import pallas as pl
from jax.experimental.pallas import tpu as pltpu


def _round_up(x, m):
    return ((x + m - 1) // m) * m


# ---------------------------------------------------------------------------
# Kernel: two MXU matmuls per batch tile, f32 elementwise in between.
#   h = tanh(x @ W1_cat + b1_cat)      (bb, size*H)   f32
#   y = h  @ W2o    + b_fused          (bb, OS_pad)   f32, lane-dense store
# ---------------------------------------------------------------------------
def mmlp_fused_kernel(x_ref, w1_ref, b1_ref, w2_ref, b_ref, y_ref):
    h = jnp.tanh(
        jnp.dot(x_ref[...], w1_ref[...], preferred_element_type=jnp.float32)
        + b1_ref[...]
    )
    y = (
        jnp.dot(h.astype(w2_ref.dtype), w2_ref[...],
                preferred_element_type=jnp.float32)
        + b_ref[...]
    )
    y_ref[...] = y.astype(y_ref.dtype)


# ---------------------------------------------------------------------------
# One-time (init-time) weight fold.  NOT on the per-call critical path.
# Inputs use PyTorch nn.Linear conventions (weight = (out_features, in_features)):
#   w1: (size, H, D)   b1: (size, H)     per-sub-model Linear(D, H)
#   w2: (size, OS, H)  b2: (size, OS)    per-sub-model Linear(H, OS)
#   wo: (OS, size*OS)  bo: (OS,)         final Linear(size*OS, OS)
# ---------------------------------------------------------------------------
def prepare_mmlp_params(w1, b1, w2, b2, wo, bo, *, compute_dtype=jnp.bfloat16):
    size, H, D = w1.shape
    OS = w2.shape[1]
    f32 = jnp.float32

    w1 = w1.astype(f32); b1 = b1.astype(f32)
    w2 = w2.astype(f32); b2 = b2.astype(f32)
    wo = wo.astype(f32); bo = bo.astype(f32)

    # Convert to the x @ W convention.
    w1_xw = jnp.transpose(w1, (0, 2, 1))                  # (size, D, H)
    w2_xw = jnp.transpose(w2, (0, 2, 1))                  # (size, H, OS)
    # Rows of wo.T are grouped per sub-model (concat order of the forward).
    wo_blocks = jnp.transpose(wo).reshape(size, OS, OS)   # (size, OS, OS)

    # Concatenated first layer (sub-model-major column order).
    w1_cat = jnp.moveaxis(w1_xw, 0, 1).reshape(D, size * H)   # (D, size*H)
    b1_cat = b1.reshape(1, size * H)

    # Fold the final Linear into the second layer, accumulated in f32:
    #   W2o_i = W2_i @ Wo_i ; fused bias = sum_i b2_i @ Wo_i + bo
    w2o = jnp.einsum('shp,spq->shq', w2_xw, wo_blocks,
                     preferred_element_type=f32).reshape(size * H, OS)
    b_fused = jnp.einsum('sp,spq->q', b2, wo_blocks,
                         preferred_element_type=f32) + bo.reshape(-1)

    # Lane-dense output: pad last dim to a multiple of 128 (unmasked vst).
    OS_pad = _round_up(OS, 128)
    if OS_pad != OS:
        w2o = jnp.pad(w2o, ((0, 0), (0, OS_pad - OS)))
        b_fused = jnp.pad(b_fused, (0, OS_pad - OS))

    return dict(
        w1_cat=w1_cat.astype(compute_dtype),       # bf16 matmul operand
        b1_cat=b1_cat,                              # f32 bias
        w2o=w2o.astype(compute_dtype),              # bf16 matmul operand
        b_fused=b_fused.reshape(1, OS_pad),         # f32 fused bias
        D=int(D), SH=int(size * H), OS=int(OS), OS_pad=int(OS_pad),
        compute_dtype=compute_dtype,
    )


# ---------------------------------------------------------------------------
# Batch-tile selection from a VMEM budget (portable across v5e/v6e/v7x).
# ---------------------------------------------------------------------------
def _tile_vmem_bytes(bb, D, SH, OS_pad, wbytes):
    x_t  = 2 * bb * D * wbytes          # double-buffered streaming input tile
    y_t  = 2 * bb * OS_pad * 4          # double-buffered f32 output tile
    w1   = D * SH * wbytes              # single-buffered resident weights
    w2   = SH * OS_pad * wbytes
    bias = (SH + OS_pad) * 4
    h    = 2 * bb * SH * 4              # f32 hidden temp (+ bf16 copy headroom)
    return x_t + y_t + w1 + w2 + bias + h


def _pick_batch_tile(B, D, SH, OS_pad, wbytes, *, bb_cap=256,
                     budget_bytes=16 << 20):
    # Largest multiple-of-8 tile <= bb_cap whose working set fits the budget.
    # (bb_cap=256 is safe on v7x / v5e; can be raised on v6e's 128 MiB VMEM.)
    bb = min(bb_cap, _round_up(B, 8))
    while bb > 8 and _tile_vmem_bytes(bb, D, SH, OS_pad, wbytes) > budget_bytes:
        bb = max(8, _round_up(bb // 2, 8))
    # Prefer >= 2 grid steps when the batch allows it so the "parallel" batch
    # axis can actually be sharded across v7x's two TensorCores.
    if B >= 16 and -(-B // bb) < 2:
        bb = _round_up(-(-B // 2), 8)
    return bb


# ---------------------------------------------------------------------------
# Per-call forward: cast+pad x, one pallas_call, slice padding off.
# ---------------------------------------------------------------------------
def parallel_concatenation_mmlp(x, params, *, bb_cap=256):
    D, SH = params["D"], params["SH"]
    OS, OS_pad = params["OS"], params["OS_pad"]
    cdt = params["compute_dtype"]
    wbytes = jnp.dtype(cdt).itemsize

    B = x.shape[0]
    bb = _pick_batch_tile(B, D, SH, OS_pad, wbytes, bb_cap=bb_cap)
    steps = -(-B // bb)                 # cdiv grid: correct for arbitrary B
    B_pad = steps * bb

    x_c = x.astype(cdt)
    if B_pad != B:
        x_c = jnp.pad(x_c, ((0, B_pad - B), (0, 0)))

    vmem_limit = int(min(96 << 20,
                         max(32 << 20,
                             int(1.25 * _tile_vmem_bytes(bb, D, SH,
                                                         OS_pad, wbytes)))))

    resident = pl.Buffered(1)   # constant index_map -> fetched once, no 2x buf

    y_pad = pl.pallas_call(
        mmlp_fused_kernel,
        out_shape=jax.ShapeDtypeStruct((B_pad, OS_pad), jnp.float32),
        grid_spec=pltpu.PrefetchScalarGridSpec(
            num_scalar_prefetch=0,
            grid=(steps,),
            in_specs=[
                pl.BlockSpec((bb, D), lambda i: (i, 0)),        # x (streams)
                pl.BlockSpec((D, SH), lambda i: (0, 0),
                             pipeline_mode=resident),           # W1_cat
                pl.BlockSpec((1, SH), lambda i: (0, 0),
                             pipeline_mode=resident),           # b1_cat
                pl.BlockSpec((SH, OS_pad), lambda i: (0, 0),
                             pipeline_mode=resident),           # W2o (folded)
                pl.BlockSpec((1, OS_pad), lambda i: (0, 0),
                             pipeline_mode=resident),           # fused bias
            ],
            out_specs=pl.BlockSpec((bb, OS_pad), lambda i: (i, 0)),
        ),
        compiler_params=pltpu.CompilerParams(
            dimension_semantics=("parallel",),   # batch axis -> 2-TC sharding
            vmem_limit_bytes=vmem_limit,
        ),
    )(x_c, params["w1_cat"], params["b1_cat"], params["w2o"],
      params["b_fused"])

    if B_pad != B or OS_pad != OS:
        return y_pad[:B, :OS]
    return y_pad


# ---------------------------------------------------------------------------
# Reference: direct transcription of the PyTorch forward (PyTorch weight conv.)
# ---------------------------------------------------------------------------
def reference(x, w1, b1, w2, b2, wo, bo):
    outs = []
    for i in range(w1.shape[0]):
        h = jnp.tanh(x @ w1[i].T + b1[i])
        outs.append(h @ w2[i].T + b2[i])
    cat = jnp.concatenate(outs, axis=1)           # (B, OS*size)
    return cat @ wo.T + bo


if __name__ == "__main__":
    # Small deterministic problem: size=3 sub-MLPs, D=16 -> H=32 -> OS=8, batch=2
    B, D, H, OS, SIZE = 2, 16, 32, 8, 3

    key = jax.random.PRNGKey(0)
    kx, k1, k2, k3, k4, k5, k6 = jax.random.split(key, 7)

    x = jax.random.normal(kx, (B, D), dtype=jnp.float32)
    # PyTorch nn.Linear conventions: weight shape is (out_features, in_features)
    w1 = jax.random.normal(k1, (SIZE, H, D), dtype=jnp.float32) * 0.1
    b1 = jax.random.normal(k2, (SIZE, H), dtype=jnp.float32) * 0.1
    w2 = jax.random.normal(k3, (SIZE, OS, H), dtype=jnp.float32) * 0.1
    b2 = jax.random.normal(k4, (SIZE, OS), dtype=jnp.float32) * 0.1
    wo = jax.random.normal(k5, (OS, SIZE * OS), dtype=jnp.float32) * 0.1
    bo = jax.random.normal(k6, (OS,), dtype=jnp.float32) * 0.1

    # Init-time weight fold (done once, off the per-call critical path).
    params = prepare_mmlp_params(w1, b1, w2, b2, wo, bo)

    y = parallel_concatenation_mmlp(x, params)
    y = jax.block_until_ready(y)

    y_ref = reference(x, w1, b1, w2, b2, wo, bo)
    # bf16 MXU operands with f32 accumulation -> relaxed tolerance vs f32 ref.
    np.testing.assert_allclose(np.asarray(y), np.asarray(y_ref),
                               rtol=2e-2, atol=2e-2)
    print("KERNEL_OK")
</pallas_src>

<mosaic_0001>
module attributes {stable_mosaic.version = 11 : i64} {
  func.func @mmlp_fused_kernel(%arg0: i32, %arg1: memref<8x16xbf16, #tpu.memory_space<vmem>>, %arg2: memref<16x96xbf16, #tpu.memory_space<vmem>>, %arg3: memref<1x96xf32, #tpu.memory_space<vmem>>, %arg4: memref<96x128xbf16, #tpu.memory_space<vmem>>, %arg5: memref<1x128xf32, #tpu.memory_space<vmem>>, %arg6: memref<8x128xf32, #tpu.memory_space<vmem>>) attributes {dimension_semantics = [#tpu.dimension_semantics<parallel>], iteration_bounds = array<i64: 1>, scalar_prefetch = 0 : i64, scratch_operands = 0 : i64, tpu.core_type = #tpu.core_type<tc>, window_params = [{transform_indices = @transform_0, window_bounds = array<i64: 8, 16>}, {pipeline_mode = #tpu.pipeline_mode<synchronous>, transform_indices = @transform_1, window_bounds = array<i64: 16, 96>}, {pipeline_mode = #tpu.pipeline_mode<synchronous>, transform_indices = @transform_2, window_bounds = array<i64: 1, 96>}, {pipeline_mode = #tpu.pipeline_mode<synchronous>, transform_indices = @transform_3, window_bounds = array<i64: 96, 128>}, {pipeline_mode = #tpu.pipeline_mode<synchronous>, transform_indices = @transform_4, window_bounds = array<i64: 1, 128>}, {transform_indices = @transform_5, window_bounds = array<i64: 8, 128>}]} {
    %c0 = arith.constant 0 : index
    %c0_0 = arith.constant 0 : index
    %0 = vector.load %arg1[%c0, %c0_0] : memref<8x16xbf16, #tpu.memory_space<vmem>>, vector<8x16xbf16>
    %c0_1 = arith.constant 0 : index
    %c0_2 = arith.constant 0 : index
    %1 = vector.load %arg2[%c0_1, %c0_2] : memref<16x96xbf16, #tpu.memory_space<vmem>>, vector<16x96xbf16>
    %cst = arith.constant dense<0.000000e+00> : vector<8x96xf32>
    %2 = tpu.matmul %0, %1, %cst {dimension_numbers = #tpu.dot_dimension_numbers<[1], [0], [0], [1], [0, 0, 1, 1], [], []>} : vector<8x16xbf16>, vector<16x96xbf16>, vector<8x96xf32> -> vector<8x96xf32>
    %c0_3 = arith.constant 0 : index
    %c0_4 = arith.constant 0 : index
    %3 = vector.load %arg3[%c0_3, %c0_4] : memref<1x96xf32, #tpu.memory_space<vmem>>, vector<1x96xf32>
    %4 = vector.broadcast %3 : vector<1x96xf32> to vector<8x96xf32>
    %5 = arith.addf %2, %4 : vector<8x96xf32>
    %6 = math.tanh %5 : vector<8x96xf32>
    %7 = arith.truncf %6 : vector<8x96xf32> to vector<8x96xbf16>
    %c0_5 = arith.constant 0 : index
    %c0_6 = arith.constant 0 : index
    %8 = vector.load %arg4[%c0_5, %c0_6] : memref<96x128xbf16, #tpu.memory_space<vmem>>, vector<96x128xbf16>
    %cst_7 = arith.constant dense<0.000000e+00> : vector<8x128xf32>
    %9 = tpu.matmul %7, %8, %cst_7 {dimension_numbers = #tpu.dot_dimension_numbers<[1], [0], [0], [1], [0, 0, 1, 1], [], []>} : vector<8x96xbf16>, vector<96x128xbf16>, vector<8x128xf32> -> vector<8x128xf32>
    %c0_8 = arith.constant 0 : index
    %c0_9 = arith.constant 0 : index
    %10 = vector.load %arg5[%c0_8, %c0_9] : memref<1x128xf32, #tpu.memory_space<vmem>>, vector<1x128xf32>
    %11 = vector.broadcast %10 : vector<1x128xf32> to vector<8x128xf32>
    %12 = arith.addf %9, %11 : vector<8x128xf32>
    %c0_10 = arith.constant 0 : index
    %c0_11 = arith.constant 0 : index
    %13 = vector.load %arg6[%c0_10, %c0_11] : memref<8x128xf32, #tpu.memory_space<vmem>>, vector<8x128xf32>
    tpu.vector_store %arg6[%c0_10, %c0_11], %12 {strides = array<i32>} : memref<8x128xf32, #tpu.memory_space<vmem>>, vector<8x128xf32>,
    return
  }
  func.func @transform_0(%arg0: i32) -> (i32, i32) {
    %c0_i32 = arith.constant 0 : i32
    %c0_i32_0 = arith.constant 0 : i32
    return %arg0, %c0_i32 : i32, i32
  }
  func.func @transform_1(%arg0: i32) -> (i32, i32) {
    %c0_i32 = arith.constant 0 : i32
    %c0_i32_0 = arith.constant 0 : i32
    %c0_i32_1 = arith.constant 0 : i32
    return %c0_i32, %c0_i32_0 : i32, i32
  }
  func.func @transform_2(%arg0: i32) -> (i32, i32) {
    %c0_i32 = arith.constant 0 : i32
    %c0_i32_0 = arith.constant 0 : i32
    %c0_i32_1 = arith.constant 0 : i32
    return %c0_i32, %c0_i32_0 : i32, i32
  }
  func.func @transform_3(%arg0: i32) -> (i32, i32) {
    %c0_i32 = arith.constant 0 : i32
    %c0_i32_0 = arith.constant 0 : i32
    %c0_i32_1 = arith.constant 0 : i32
    return %c0_i32, %c0_i32_0 : i32, i32
  }
  func.func @transform_4(%arg0: i32) -> (i32, i32) {
    %c0_i32 = arith.constant 0 : i32
    %c0_i32_0 = arith.constant 0 : i32
    %c0_i32_1 = arith.constant 0 : i32
    return %c0_i32, %c0_i32_0 : i32, i32
  }
  func.func @transform_5(%arg0: i32) -> (i32, i32) {
    %c0_i32 = arith.constant 0 : i32
    %c0_i32_0 = arith.constant 0 : i32
    return %arg0, %c0_i32 : i32, i32
  }
}

</mosaic_0001>

<bundles_post_ra>
// kernel: tpu_custom_call.1
= control target key start
LH: loop header
LB: loop body
LE: loop exit
PB: predicated region body
PF: predicated region fallthrough
CT: control target
= control target key end

     0   :  { %10 = vsyncpa [#allocation3], 0  ;;  %s490_s0 = inlined_call_operand.hbm [shape: bf16[8,16], index: 0, kind: input, shape index: {}]   ;;  %s491_s1 = inlined_call_operand.hbm [shape: bf16[16,96], index: 1, kind: input, shape index: {}]   ;;  %s492_s2 = inlined_call_operand.vmem [shape: f32[1,96], index: 2, kind: input, shape index: {}]   ;;  %s493_s3 = inlined_call_operand.hbm [shape: bf16[96,128], index: 3, kind: input, shape index: {}]   ;;  %s494_s4 = inlined_call_operand.vmem [shape: f32[1,128], index: 4, kind: input, shape index: {}]   ;;  %s495_s5 = inlined_call_operand.hbm [shape: f32[8,128], index: 5, kind: output, shape index: {}]  }
   0x1   :  { %11 = vsyncpa [#allocation6], 0 }
   0x2   :  { %12 = vsyncpa [#allocation4], 0  ;;  %s392_s18 = smov [#allocation5]   ;;  %s298_s22 = scalar_lea.hbm %s491_s1, 128 }
   0x3   :  { %s28_s19 = sshll.u32 %s392_s18, 4  ;;  %p299_p0 = scmp.ne.s32.totalorder %s491_s1, %s298_s22  ;;  %s29_s19 = int_to_ptr.vmem [resolvable:$true] %s28_s19 }
   0x4   :  { %p302_p1 = scmp.lt.u32.totalorder %s298_s22, %s491_s1 }
   0x6   :  { %p304_p2 = pnand %p302_p1, %p299_p0 }
   0x8   :  { %307 = shalt.err (!%p304_p2)
}
   0x9   :  { %s308_s27 = scalar_lea.vmem %s29_s19, 128  ;;  %p313_p4 = scmp.lt.s32.totalorder %s29_s19, %s29_s19 }
   0xa   :  { %p309_p3 = scmp.ne.s32.totalorder %s29_s19, %s308_s27  ;;  %p314_p5 = scmp.lt.s32.totalorder %s308_s27, %s308_s27 }
   0xc   :  { %p315_p6 = por %p314_p5, %p313_p4 }
   0xe   :  { %p316_p7 = pnand %p315_p6, %p309_p3 }
  0x10   :  { %319 = shalt.err (!%p316_p7)
}
  0x11   :  { %s393_s28 = smov 64   ;;  %s394_s29 = smov 4  }
  0x12   :  { %34 = dma.hbm_to_vmem [thread:$0]  %s491_s1, 128, %s29_s19, [#allocation6], %s393_s28, %s393_s28, %s394_s29  }
  0x13   :  { %s395_s7 = smov [#allocation2]   ;;  %s396_s9 = smov [#allocation7]  }
  0x14   :  { %s19_s8 = sshll.u32 %s395_s7, 4  ;;  %s42_s10 = sshll.u32 %s396_s9, 4  ;;  %s20_s8 = int_to_ptr.vmem [resolvable:$true] %s19_s8  ;;  %s43_s10 = int_to_ptr.vmem [resolvable:$true] %s42_s10 }
  0x15   :  { %s320_s13 = scalar_lea.hbm %s490_s0, 64 }
  0x16   :  { %p321_p8 = scmp.ne.s32.totalorder %s490_s0, %s320_s13  ;;  %p324_p9 = scmp.lt.u32.totalorder %s320_s13, %s490_s0 }
  0x18   :  { %p326_p10 = pnand %p324_p9, %p321_p8 }
  0x1a   :  { %329 = shalt.err (!%p326_p10)
}
  0x1b   :  { %s330_s1 = scalar_lea.vmem %s20_s8, 64  ;;  %p335_p12 = scmp.lt.s32.totalorder %s20_s8, %s20_s8 }
  0x1c   :  { %p331_p11 = scmp.ne.s32.totalorder %s20_s8, %s330_s1  ;;  %p336_p13 = scmp.lt.s32.totalorder %s330_s1, %s330_s1 }
  0x1e   :  { %p337_p0 = por %p336_p13, %p335_p12 }
  0x20   :  { %p338_p1 = pnand %p337_p0, %p331_p11 }
  0x22   :  { %341 = shalt.err (!%p338_p1)
}
  0x23   :  { %22 = dma.hbm_to_vmem [thread:$0]  %s490_s0, 64, %s20_s8, [#allocation3]  }
  0x24   :  { %s342_s22 = scalar_lea.hbm %s493_s3, 768 }
  0x25   :  { %p343_p2 = scmp.ne.s32.totalorder %s493_s3, %s342_s22  ;;  %p346_p3 = scmp.lt.u32.totalorder %s342_s22, %s493_s3 }
  0x27   :  { %p348_p4 = pnand %p346_p3, %p343_p2 }
  0x29   :  { %351 = shalt.err (!%p348_p4)
}
  0x2a   :  { %s352_s27 = scalar_lea.vmem %s43_s10, 768  ;;  %p357_p6 = scmp.lt.s32.totalorder %s43_s10, %s43_s10 }
  0x2b   :  { %p353_p5 = scmp.ne.s32.totalorder %s43_s10, %s352_s27  ;;  %p358_p7 = scmp.lt.s32.totalorder %s352_s27, %s352_s27 }
  0x2d   :  { %p359_p8 = por %p358_p7, %p357_p6 }
  0x2f   :  { %p360_p9 = pnand %p359_p8, %p353_p5 }
  0x31   :  { %363 = shalt.err (!%p360_p9)
}
  0x32   :  { %48 = dma.hbm_to_vmem [thread:$0]  %s493_s3, 768, %s43_s10, [#allocation6], %s393_s28, %s393_s28, %s394_s29  }
  0x33   :  { %386 = dma.done.wait [#allocation3], 64  }
  0x34   :  { %387 = vsyncadd [#allocation3], 4294967232 }
  0x35   :  { %388 = dma.done.wait [#allocation6], 896  }
  0x36   :  { %389 = vsyncadd [#allocation6], 4294966400  ;;  %v397_v0 = vmov 0.0   ;;  %vm398_vm0 = vmmov 0   ;;  %v289_v1 = vld [vmem:[#allocation5] sm:$0xff]   ;;  %vm77_vm1 = vcmask 130048  }
  0x37   :  { %259 = vmatprep.subr.bf16.mxu0 %v397_v0  ;;  %261 = vmatprep.mubr.msk.bf16.mxu0 %vm398_vm0, %v397_v0  ;;  %v61_v2 = vld [vmem:[#allocation2] sm:$0xf]  ;;  %v290_v3 = vld [vmem:[#allocation7] sm:$0xff]   ;;  %v291_v4 = vld [vmem:[#allocation7 + $0x8] sm:$0xff]   ;;  %vm178_vm2 = vcmask 785408   ;;  %s399_s7 = smov [#allocation8]  }
  0x38   :  { %265 = vmatprep.subr.bf16.mxu1 %v397_v0  ;;  %277 = vmatprep.mubr.msk.bf16.mxu1 %vm398_vm0, %v397_v0  ;;  %v292_v5 = vld [vmem:[#allocation7 + $0x10] sm:$0xff]   ;;  %v293_v6 = vld [vmem:[#allocation7 + $0x18] sm:$0xff]   ;;  %v294_v7 = vld [vmem:[#allocation7 + $0x20] sm:$0xff]   ;;  %s229_s8 = sshll.u32 %s399_s7, 4  ;;  %s230_s8 = int_to_ptr.vmem [resolvable:$true] %s229_s8 }
  0x39   :  { %260 = vmatpush3.bf16.msra.mxu0 %v289_v1  ;;  %266 = vmatpush3.bf16.msra.mxu1 %v290_v3  ;;  %v295_v8 = vld [vmem:[#allocation7 + $0x28] sm:$0xff]   ;;  %v239_v9 = vld [vmem:[%s492_s2] ss:$0 sm:$0xff]  ;;  %s364_s2 = scalar_lea.vmem %s230_s8, 128  ;;  %p369_p11 = scmp.lt.s32.totalorder %s230_s8, %s230_s8 }
  0x3a   :  { %267 = vmatprep.subr.bf16.mxu1 %v397_v0  ;;  %v242_v17 = vld [vmem:[%s494_s4] ss:$0 sm:$0xff]  ;;  %p365_p10 = scmp.ne.s32.totalorder %s230_s8, %s364_s2  ;;  %p370_p12 = scmp.lt.s32.totalorder %s364_s2, %s364_s2 }
  0x3c   :  { %262 = vmatmul.mubr.msk.bf16.vlgmr.msra.gmra.mrb[0].mxu0 %vm77_vm1, %v61_v2  ;;  %p371_p13 = por %p370_p12, %p369_p11 }
  0x3d   :  { %268 = vmatpush3.bf16.msra.mxu1 %v291_v4 }
  0x3e   :  { %269 = vmatprep.subr.bf16.mxu1 %v397_v0  ;;  %p372_p0 = pnand %p371_p13, %p365_p10 }
  0x41   :  { %270 = vmatpush3.bf16.msra.mxu1 %v292_v5 }
  0x42   :  { %271 = vmatprep.subr.bf16.mxu1 %v397_v0 }
  0x45   :  { %272 = vmatpush3.bf16.msra.mxu1 %v293_v6 }
  0x46   :  { %273 = vmatprep.subr.bf16.mxu1 %v397_v0 }
  0x49   :  { %274 = vmatpush3.bf16.msra.mxu1 %v294_v7 }
  0x4a   :  { %275 = vmatprep.subr.bf16.mxu1 %v397_v0 }
  0x4d   :  { %276 = vmatpush3.bf16.msra.mxu1 %v295_v8 }
 0x10f   :  { %v115_v10 = vpop.f32.mrb[0].mxu0 }
 0x110   :  { %v116_v11 = vadd.f32 %v239_v9, %v115_v10  ;;  %v263_v12 = vpop.f32.mrb[1].mxu0 }
 0x111   :  { %v118_v13 = vpop.f32.mrb[2].mxu0 }
 0x112   :  { %296 = vtanh.f32 %v116_v11  ;;  %v264_v14 = vpop.f32.mrb[3].mxu0 }
 0x11c   :  { %v297_v15 = vpop.eup %296 }
 0x11d   :  { %v122_v16 = vpack.c.bf16 %v297_v15, %v297_v15 }
 0x11f   :  { %278 = vmatmul.mubr.msk.bf16.vlgmr.msra.gmra.mrb[0].mxu1 %vm178_vm2, %v122_v16 }
 0x1f2   :  { %v216_v18 = vpop.f32.mrb[0].mxu1 }
 0x1f3   :  { %v217_v19 = vadd.f32 %v242_v17, %v216_v18  ;;  %v279_v20 = vpop.f32.mrb[1].mxu1 }
 0x1f4   :  { %v219_v21 = vpop.f32.mrb[2].mxu1 }
 0x1f5   :  { %222 = vst [vmem:[#allocation8] sm:$0xff] %v217_v19  ;;  %v280_v22 = vpop.f32.mrb[3].mxu1 }
 0x1f6   :  { %375 = shalt.err (!%p372_p0)
}
 0x1f7   :  { %s376_s4 = scalar_lea.hbm %s495_s5, 128 }
 0x1f8   :  { %p377_p1 = scmp.ne.s32.totalorder %s495_s5, %s376_s4  ;;  %p380_p2 = scmp.lt.u32.totalorder %s376_s4, %s495_s5 }
 0x1fa   :  { %p382_p3 = pnand %p380_p2, %p377_p1 }
 0x1fc   :  { %385 = shalt.err (!%p382_p3)
}
 0x1fd   :  { %232 = dma.vmem_to_hbm [thread:$0]  %s230_s8, 128, %s495_s5, [#allocation4]  }
 0x1fe   :  { %390 = dma.done.wait [#allocation4], 128  }
 0x1ff   :  { %391 = vsyncadd [#allocation4], 4294967168 }
 0x200   :  { %236 = vsyncpa [#allocation3], 1 }
 0x201   :  { %237 = vsyncpa [#allocation6], 1 }
 0x202   :  { %238 = vsyncpa [#allocation4], 1 }

</bundles_post_ra>
